<compile_context>
chip_gen: v5e
topology: v5e:2x2
jax: 0.10.0
libtpu: 0.0.40
codegen_flags: <defaults>
</compile_context>

<pallas_src>
import jax
import jax.numpy as jnp
from jax.experimental import pallas as pl
from jax.experimental.pallas import tpu as pltpu


def _round_up(x, m):
    return (x + m - 1) // m * m


def _patch_embed_kernel(xp_ref, w_ref, b_ref, o_ref):
    # xp_ref: (TM, K)  compute dtype   patch tile (K = 3*p*p, full, untiled)
    # w_ref : (K, Sp)  compute dtype   projection weight (resident across grid)
    # b_ref : (1, Sp)  f32             bias (resident across grid)
    # o_ref : (TM, Sp) out dtype
    acc = jnp.dot(xp_ref[...], w_ref[...], preferred_element_type=jnp.float32)
    o_ref[...] = (acc + b_ref[...]).astype(o_ref.dtype)


def patch_embedding(x, weight, bias, patch_size, *,
                    compute_dtype=jnp.bfloat16, out_dtype=None, layout="NCHW"):
    """x: (N, 3, H, W), weight: (S, 3, p, p), bias: (S,).

    layout="NCHW" -> (N, S, H/p, W/p)  (matches nn.Conv2d / the PyTorch module)
    layout="NLC"  -> (N, (H/p)*(W/p), S)  token layout, no output transpose.
    """
    N, C, H, W = x.shape
    S = weight.shape[0]
    p = patch_size
    assert H % p == 0 and W % p == 0, "spatial dims must be divisible by patch_size"
    Hp, Wp = H // p, W // p
    M, K = N * Hp * Wp, C * p * p

    if out_dtype is None:
        # guard: never silently keep an integer/quantized input dtype
        out_dtype = x.dtype if jnp.issubdtype(x.dtype, jnp.floating) else jnp.float32

    # --- glue: NCHW -> (M, K) patch matrix; cast fused into the same producer
    # chain so xp is materialized exactly once (no separate pad/cast passes).
    xp = jnp.transpose(x.reshape(N, C, Hp, p, Wp, p), (0, 2, 4, 1, 3, 5))
    xp = xp.reshape(M, K).astype(compute_dtype)

    # --- glue: weight (S, C, p, p) -> (K, S), bias -> (1, S) f32 (tiny tensors)
    w_mat = weight.reshape(S, K).T.astype(compute_dtype)
    b_mat = bias.reshape(1, S).astype(jnp.float32)

    # --- tiling -------------------------------------------------------------
    LANE = 128
    SUB = 16 if jnp.dtype(compute_dtype).itemsize == 2 else 8
    Sp = _round_up(S, LANE)                      # lane-dense output columns only
    if M <= SUB:
        TM = M                                   # one full-extent block
    else:
        # >=2 tiles when possible (v7x megacore), <=1024 rows per tile
        TM = min(1024, _round_up(pl.cdiv(M, 2), SUB))
    num_tiles = pl.cdiv(M, TM)                   # no M padding; last block masked

    w_p = jnp.pad(w_mat, ((0, 0), (0, Sp - S))) if Sp != S else w_mat
    b_p = jnp.pad(b_mat, ((0, 0), (0, Sp - S))) if Sp != S else b_mat

    ci = jnp.dtype(compute_dtype).itemsize
    oi = jnp.dtype(out_dtype).itemsize

    cost = pl.CostEstimate(
        flops=2 * M * K * Sp,
        transcendentals=0,
        bytes_accessed=(M * K * ci + K * Sp * ci + Sp * 4 + M * Sp * oi),
    )

    # double-buffered xp/out tiles + (still double-buffered) resident weight/bias
    vmem_bytes = (2 * TM * K * ci + 2 * TM * Sp * oi + TM * Sp * 4
                  + 2 * K * Sp * ci + 2 * Sp * 4)
    vmem_limit = int(min(max(vmem_bytes + (4 << 20), 16 << 20), 64 << 20))

    out_flat = pl.pallas_call(
        _patch_embed_kernel,
        out_shape=jax.ShapeDtypeStruct((M, Sp), out_dtype),
        grid=(num_tiles,),
        in_specs=[
            pl.BlockSpec((TM, K), lambda i: (i, 0)),     # patch tile (K untiled)
            pl.BlockSpec((K, Sp), lambda i: (0, 0)),     # resident weight
            pl.BlockSpec((1, Sp), lambda i: (0, 0)),     # resident bias
        ],
        out_specs=pl.BlockSpec((TM, Sp), lambda i: (i, 0)),
        compiler_params=pltpu.CompilerParams(
            dimension_semantics=("parallel",),
            vmem_limit_bytes=vmem_limit,
        ),
        cost_estimate=cost,
    )(xp, w_p, b_p)

    out = out_flat[:, :S] if Sp != S else out_flat       # (M, S)
    if layout == "NLC":
        return out.reshape(N, Hp * Wp, S)                 # token layout, no transpose
    # NCHW, matching nn.Conv2d(3, S, kernel_size=p, stride=p)
    return jnp.transpose(out.reshape(N, Hp, Wp, S), (0, 3, 1, 2))


if __name__ == "__main__":
    # Small shapes consistent with the module: 3 input channels (fixed by the
    # module), size=32 output channels, patch_size=4, image 16x16, batch=2.
    batch, in_ch, H, W = 2, 3, 16, 16
    size, patch_size = 32, 4

    key = jax.random.PRNGKey(0)
    kx, kw, kb = jax.random.split(key, 3)
    x = jax.random.normal(kx, (batch, in_ch, H, W), dtype=jnp.float32)
    # Deterministic parameters (synthetic; mirror Conv2d parameter shapes)
    weight = jax.random.normal(kw, (size, in_ch, patch_size, patch_size),
                               dtype=jnp.float32) * 0.05
    bias = jax.random.normal(kb, (size,), dtype=jnp.float32) * 0.05

    out = patch_embedding(x, weight, bias, patch_size)            # NCHW (module semantics)
    out = jax.block_until_ready(out)
    out_tok = patch_embedding(x, weight, bias, patch_size, layout="NLC")
    out_tok = jax.block_until_ready(out_tok)

    # Reference: XLA strided conv (== non-overlapping patch projection).
    # Kernel computes in bf16 (f32 accumulate), so tolerance is loosened.
    ref = jax.lax.conv_general_dilated(
        x, weight,
        window_strides=(patch_size, patch_size),
        padding="VALID",
        dimension_numbers=("NCHW", "OIHW", "NCHW"),
    ) + bias.reshape(1, size, 1, 1)

    Hp, Wp = H // patch_size, W // patch_size
    assert out.shape == (batch, size, Hp, Wp), out.shape
    assert jnp.allclose(out, ref, atol=5e-2, rtol=5e-2), "NCHW mismatch vs conv reference"
    ref_tok = jnp.transpose(ref, (0, 2, 3, 1)).reshape(batch, Hp * Wp, size)
    assert out_tok.shape == (batch, Hp * Wp, size), out_tok.shape
    assert jnp.allclose(out_tok, ref_tok, atol=5e-2, rtol=5e-2), "NLC mismatch vs conv reference"

    print("KERNEL_OK")
</pallas_src>

<mosaic_0001>
module attributes {stable_mosaic.version = 11 : i64} {
  func.func @_patch_embed_kernel(%arg0: i32, %arg1: memref<16x48xbf16, #tpu.memory_space<vmem>>, %arg2: memref<48x128xbf16, #tpu.memory_space<vmem>>, %arg3: memref<1x128xf32, #tpu.memory_space<vmem>>, %arg4: memref<16x128xf32, #tpu.memory_space<vmem>>) attributes {dimension_semantics = [#tpu.dimension_semantics<parallel>], iteration_bounds = array<i64: 2>, scalar_prefetch = 0 : i64, scratch_operands = 0 : i64, tpu.core_type = #tpu.core_type<tc>, window_params = [{transform_indices = @transform_0, window_bounds = array<i64: 16, 48>}, {pipeline_mode = #tpu.pipeline_mode<synchronous>, transform_indices = @transform_1, window_bounds = array<i64: 48, 128>}, {pipeline_mode = #tpu.pipeline_mode<synchronous>, transform_indices = @transform_2, window_bounds = array<i64: 1, 128>}, {transform_indices = @transform_3, window_bounds = array<i64: 16, 128>}]} {
    %c0 = arith.constant 0 : index
    %c0_0 = arith.constant 0 : index
    %0 = vector.load %arg1[%c0, %c0_0] : memref<16x48xbf16, #tpu.memory_space<vmem>>, vector<16x48xbf16>
    %c0_1 = arith.constant 0 : index
    %c0_2 = arith.constant 0 : index
    %1 = vector.load %arg2[%c0_1, %c0_2] : memref<48x128xbf16, #tpu.memory_space<vmem>>, vector<48x128xbf16>
    %cst = arith.constant dense<0.000000e+00> : vector<16x128xf32>
    %2 = tpu.matmul %0, %1, %cst {dimension_numbers = #tpu.dot_dimension_numbers<[1], [0], [0], [1], [0, 0, 1, 1], [], []>} : vector<16x48xbf16>, vector<48x128xbf16>, vector<16x128xf32> -> vector<16x128xf32>
    %c0_3 = arith.constant 0 : index
    %c0_4 = arith.constant 0 : index
    %3 = vector.load %arg3[%c0_3, %c0_4] : memref<1x128xf32, #tpu.memory_space<vmem>>, vector<1x128xf32>
    %4 = vector.broadcast %3 : vector<1x128xf32> to vector<16x128xf32>
    %5 = arith.addf %2, %4 : vector<16x128xf32>
    %c0_5 = arith.constant 0 : index
    %c0_6 = arith.constant 0 : index
    %6 = vector.load %arg4[%c0_5, %c0_6] : memref<16x128xf32, #tpu.memory_space<vmem>>, vector<16x128xf32>
    tpu.vector_store %arg4[%c0_5, %c0_6], %5 {strides = array<i32>} : memref<16x128xf32, #tpu.memory_space<vmem>>, vector<16x128xf32>,
    return
  }
  func.func @transform_0(%arg0: i32) -> (i32, i32) {
    %c0_i32 = arith.constant 0 : i32
    %c0_i32_0 = arith.constant 0 : i32
    return %arg0, %c0_i32 : i32, i32
  }
  func.func @transform_1(%arg0: i32) -> (i32, i32) {
    %c0_i32 = arith.constant 0 : i32
    %c0_i32_0 = arith.constant 0 : i32
    %c0_i32_1 = arith.constant 0 : i32
    return %c0_i32, %c0_i32_0 : i32, i32
  }
  func.func @transform_2(%arg0: i32) -> (i32, i32) {
    %c0_i32 = arith.constant 0 : i32
    %c0_i32_0 = arith.constant 0 : i32
    %c0_i32_1 = arith.constant 0 : i32
    return %c0_i32, %c0_i32_0 : i32, i32
  }
  func.func @transform_3(%arg0: i32) -> (i32, i32) {
    %c0_i32 = arith.constant 0 : i32
    %c0_i32_0 = arith.constant 0 : i32
    return %arg0, %c0_i32 : i32, i32
  }
}

</mosaic_0001>

<bundles_post_ra>
// kernel: tpu_custom_call.1
= control target key start
LH: loop header
LB: loop body
LE: loop exit
PB: predicated region body
PF: predicated region fallthrough
CT: control target
= control target key end

     0   :  { %8 = vsyncpa [#allocation3], 0  ;;  %s771_s0 = inlined_call_operand.hbm [shape: bf16[32,48], index: 0, kind: input, shape index: {}]   ;;  %s772_s1 = inlined_call_operand.hbm [shape: bf16[48,128], index: 1, kind: input, shape index: {}]   ;;  %s773_s2 = inlined_call_operand.vmem [shape: f32[1,128], index: 2, kind: input, shape index: {}]   ;;  %s774_s3 = inlined_call_operand.hbm [shape: f32[32,128], index: 3, kind: output, shape index: {}]  }
   0x1   :  { %10 = vsyncpa [#allocation3 + $0x1], 0 }
   0x2   :  { %11 = vsyncpa [#allocation6], 0 }
   0x3   :  { %12 = vsyncpa [#allocation4], 0 }
   0x4   :  { %14 = vsyncpa [#allocation4 + $0x1], 0  ;;  %s623_s12 = smov 0   ;;  %s625_s13 = smov 0  }
   0x5   :  { %s627_s14 = smov 0   ;;  %s629_s15 = smov 0  }
   0x6 LB: > { %s644_s16 = sadd.s32 4294967295, %s596_s15   ;;  %s365_s17 = sadd.s32 4294967294, %s596_s15   ;;  %s596_s15 = sphi %s629_s15, %s784_s15   ;;  %s592_s14 = sphi %s627_s14, %s783_s14   ;;  %s588_s13 = sphi %s625_s13, %s782_s13   ;;  %s584_s12 = sphi %s623_s12, %s781_s12  }
   0x7   : > { %p40_p0 = scmp.ne.s32.totalorder %s588_s13, %s584_s12  ;;  %p41_p1 = scmp.eq.s32.totalorder %s644_s16, 0 }
   0x8   : > { %p106_p2 = scmp.eq.s32.totalorder %s644_s16, 1  ;;  %p112_p3 = scmp.eq.s32.totalorder %s365_s17, 1 }
   0x9   : > { %p653_p4 = por %p41_p1, %p40_p0  ;;  %p366_p5 = scmp.ge.s32.totalorder %s596_s15, 1 }
   0xa   : > { %p658_p6 = por %p112_p3, %p40_p0  ;;  %p119_p7 = scmp.lt.s32.totalorder %s596_s15, 3 }
   0xb   : > { %s130_s22 = sshll.u32 %s772_s1, 4  ;;  %s598_s24 = smov [#allocation5]   ;;  %s131_s22 = int_to_ptr.hbm [resolvable:$true] %s130_s22 }
   0xc   : > { %p666_p8 = pnand %p366_p5, %p119_p7  ;;  %s132_s25 = sshll.u32 %s598_s24, 4  ;;  %s133_s25 = int_to_ptr.vmem [resolvable:$true] %s132_s25 }
   0xd   : > { %s676_s26 = sadd.s32 1, %s596_s15   ;;  %s599_s27 = smov 64  }
   0xe   : > { %p412_p9 = pneg %p666_p8  ;;  %s600_s28 = smov 4  }
   0xf   : > { %s24_s29 = ssub.s32 %s596_s15, %s676_s26  ;;  %s27_s30 = sadd.s32 1, %s592_s14 }
  0x10   : > { %p413_p10 = pnand %p412_p9, %p41_p1  ;;  %p25_p12 = scmp.eq.s32.totalorder %s24_s29, 0 }
  0x11   : > { %p34_p13 = scmp.ne.s32.totalorder %s592_s14, %s588_s13  ;;  %p35_p0 = scmp.eq.s32.totalorder %s596_s15, 0 }
  0x12   : > { %415 = dma.hbm_to_vmem [thread:$0]  (!%p413_p10), %s131_s22, 384, %s133_s25, [#allocation6], %s599_s27, %s599_s27, %s600_s28  }
  0x13   : > { %s688_s4 = scalar_select %p25_p12, %s592_s14, %s27_s30  }
  0x14   : > { %p692_p3 = por %p106_p2, %p34_p13  ;;  %p425_p5 = scmp.lt.s32.totalorder %s596_s15, 2 }
  0x15   : > { %s149_s6 = sand.u32 1, %s592_s14   ;;  %s398_s7 = sshll.u32 %s596_s15, 3 }
  0x16   : > { %p36_p7 = por %p35_p0, %p34_p13  ;;  %s369_s8 = sshll.u32 %s149_s6, 3 }
  0x17   : > { %s158_s11 = scalar_lea.hbm %s771_s0, %s398_s7  ;;  %s153_s20 = scalar_lea.vmem [#allocation2], %s369_s8 }
  0x18   : > { %s159_s17 = sshll.u32 %s158_s11, 4  ;;  %s161_s21 = sshll.u32 %s153_s20, 4  ;;  %s160_s17 = int_to_ptr.hbm [resolvable:$true] %s159_s17  ;;  %s162_s21 = int_to_ptr.vmem [resolvable:$true] %s161_s21 }
  0x19   : > { %p702_p9 = pnand %p425_p5, %p36_p7  ;;  %s150_s24 = scalar_lea.sflag [#allocation3], %s149_s6 }
  0x1a   : > { %s496_s25 = sshra.s32 %s160_s17, 4  ;;  %s503_s8 = scalar_lea.hbm %s771_s0, 16  ;;  %s497_s25 = int_to_ptr.hbm [resolvable:$true] %s496_s25 }
  0x1b   : > { %s498_s29 = scalar_lea.hbm %s497_s25, 8  ;;  %p500_p10 = pneg %p702_p9 }
  0x1c   : > { %p499_p2 = scmp.ne.s32.totalorder %s497_s25, %s498_s29  ;;  %p504_p0 = scmp.lt.s32.totalorder %s497_s25, %s771_s0 }
  0x1d   : > { %p505_p5 = scmp.lt.s32.totalorder %s503_s8, %s498_s29 }
  0x1e   : > { %p501_p12 = pnand %p500_p10, %p499_p2 }
  0x1f   : > { %p506_p7 = por %p505_p5, %p504_p0 }
  0x20   : > { %p502_p13 = pneg %p501_p12 }
  0x22   : > { %p507_p11 = pnand %p506_p7, %p502_p13 }
  0x24   : > { %510 = shalt.err (!%p507_p11)
}
  0x25   : > { %419 = dma.hbm_to_vmem [thread:$0]  (!%p702_p9), %s160_s17, 128, %s162_s21, %s150_s24, %s599_s27, %s599_s27, %s600_s28  }
  0x26   : > { %173 = sbr.rel (%p666_p8) target bundleno = 198 (0xc6), region = 32  ;;  %s722_s6 = sand.u32 (!%p666_p8), 1, %s588_s13  }
  0x27   : > { %s373_s11 = sshll.u32 (!%p666_p8), %s722_s6, 3  ;;  %s176_s20 = scalar_lea.sflag (!%p666_p8), [#allocation3], %s722_s6 }
  0x28   : > { %s179_s25 = scalar_lea.vmem (!%p666_p8), [#allocation2], %s373_s11 }
  0x2b   : > { %571 = dma.done.wait (%p653_p4), %s176_s20, 128  }
  0x2c   : > { %573 = vsyncadd (%p653_p4), %s176_s20, 4294967168 }
  0x2d   : > { %575 = dma.done.wait (%p41_p1), [#allocation6], 384  }
  0x2e   : > { %577 = vsyncadd (%p41_p1), [#allocation6], 4294966912  ;;  %v402_v0 = vld [vmem:[#allocation5 + $0x10] sm:$0xff]  ;;  %v401_v1 = vld [vmem:[#allocation5 + $0x8] sm:$0xff]  ;;  %vm246_vm0 = vcmask 392192   ;;  %s375_s18 = sshll.u32 %s722_s6, 4 }
  0x2f   : > { %255 = vmatpush.bf16.msra.mxu0 %v402_v0  ;;  %v400_v2 = vld [vmem:[#allocation5] sm:$0xff]  ;;  %v399_v3 = vld [vmem:[%s179_s25] sm:$0xff]  ;;  %s403_s28 = sshll.u32 %s644_s16, 4  ;;  %s207_s24 = scalar_lea.vmem [#allocation7], %s375_s18 }
  0x30   : > { %v465_v4 = vld [vmem:[%s773_s2] ss:$0 sm:$0xff]  ;;  %s278_s22 = scalar_lea.hbm %s774_s3, %s403_s28  ;;  %s279_s29 = sshll.u32 %s207_s24, 4  ;;  %s280_s29 = int_to_ptr.vmem [resolvable:$true] %s279_s29 }
  0x31   : > { %s281_s30 = sshll.u32 %s278_s22, 4  ;;  %s267_s7 = scalar_lea.sflag [#allocation4], %s722_s6  ;;  %s282_s30 = int_to_ptr.hbm [resolvable:$true] %s281_s30 }
  0x32   : > { %s540_s8 = sshra.s32 %s282_s30, 4  ;;  %s546_s11 = scalar_lea.hbm %s774_s3, 32  ;;  %s541_s8 = int_to_ptr.hbm [resolvable:$true] %s540_s8 }
  0x33   : > { %256 = vmatpush.bf16.msra.mxu0 %v401_v1  ;;  %s542_s16 = scalar_lea.hbm %s541_s8, 16  ;;  %p547_p11 = scmp.lt.s32.totalorder %s541_s8, %s774_s3 }
  0x34   : > { %p543_p1 = scmp.ne.s32.totalorder %s541_s8, %s542_s16  ;;  %p548_p9 = scmp.lt.s32.totalorder %s546_s11, %s542_s16 }
  0x36   : > { %p544_p4 = pnand %p543_p1, %p692_p3  ;;  %p549_p2 = por %p548_p9, %p547_p11 }
  0x37   : > { %257 = vmatpush.bf16.msra.mxu0 %v400_v2 }
  0x38   : > { %p545_p8 = pneg %p544_p4 }
  0x3a   : > { %392 = vmatmul.msk.bf16.vlgmr.msra.gmra.mxu0 %vm246_vm0, %v399_v3  ;;  %p550_p10 = pnand %p549_p2, %p545_p8 }
  0xb7   : > { %v259_v5 = vpop.f32.mrf.mxu0 }
  0xb8   : > { %v260_v6 = vadd.f32 %v465_v4, %v259_v5 }
  0xba   : > { %264 = vst [vmem:[%s207_s24] sm:$0xff] %v260_v6 }
  0xbf   : > { %v261_v7 = vpop.f32.mrf.mxu0 }
  0xc0   : > { %v262_v8 = vadd.f32 %v465_v4, %v261_v7 }
  0xc2   : > { %265 = vst [vmem:[%s207_s24 + $0x8] sm:$0xff] %v262_v8 }
  0xc3   : > { %553 = shalt.err (!%p550_p10)
}
  0xc4   : > { %s601_s6 = smov 128   ;;  %s602_s18 = smov 8  }
  0xc5   : > { %410 = dma.vmem_to_hbm [thread:$0]  (%p692_p3), %s280_s29, 256, %s282_s30, %s267_s7, %s601_s6, %s601_s6, %s602_s18  }
  0xc6 PF: > { %s296_s23 = sand.u32 1, %s584_s12   ;;  %p780_p12 = scmp.ge.s32.totalorder %s596_s15, 2 }
  0xc7   : > { %s297_s27 = scalar_lea.sflag [#allocation4], %s296_s23 }
  0xc8   : > { %p421_p13 = pnand %p780_p12, %p658_p6 }
  0xca   : > { %p422_p0 = pneg %p421_p13 }
  0xcc   : > { %579 = dma.done.wait (%p422_p0), %s297_s27, 256  }
  0xcd   : > { %581 = vsyncadd (%p422_p0), %s297_s27, 4294967040  ;;  %p17_p5 = scmp.ge.s32.totalorder %s676_s26, 4   ;;  %s781_s12 = smov %s588_s13 }
  0xce   : > { %s782_s13 = smov %s592_s14  ;;  %s783_s14 = smov %s688_s4 }
  0xcf   : > { %s784_s15 = smov %s676_s26  ;;  %19 = sbr.rel (!%p17_p5) target bundleno = 6 (0x6), region = 81 }
  0xd4   :  { %303 = vsyncpa [#allocation3], 1 }
  0xd5   :  { %305 = vsyncpa [#allocation3 + $0x1], 1 }
  0xd6   :  { %306 = vsyncpa [#allocation6], 1 }
  0xd7   :  { %307 = vsyncpa [#allocation4], 1 }
  0xd8   :  { %309 = vsyncpa [#allocation4 + $0x1], 1 }

</bundles_post_ra>
